<compile_context>
chip_gen: v5e
topology: v5e:2x2
jax: 0.10.0
libtpu: 0.0.40
codegen_flags: <defaults>
</compile_context>

<pallas_src>
import functools

import jax
import jax.numpy as jnp
import numpy as np
from jax.experimental import pallas as pl
from jax.experimental.pallas import tpu as pltpu


def _round_up(x: int, m: int) -> int:
    return ((x + m - 1) // m) * m


def _make_vae_encoder_kernel(n_hidden: int, latent_pad: int):
    """Kernel: hidden MLP + split mean/logvar heads + reparam + per-row KL."""

    def kernel(*refs):
        # refs = (x, W_0..W_{H-1}, b_0..b_{H-1}, W_mean, W_logvar, b_mean,
        #         b_logvar, eps, z_out, kl_rows_out)
        x_ref = refs[0]
        w_refs = refs[1:1 + n_hidden]
        b_refs = refs[1 + n_hidden:1 + 2 * n_hidden]
        idx = 1 + 2 * n_hidden
        w_mean_ref, w_logv_ref, b_mean_ref, b_logv_ref, eps_ref = refs[idx:idx + 5]
        z_ref, kl_ref = refs[idx + 5:idx + 7]

        # Hidden layers: Linear + ReLU. Matmul operands in w.dtype (f32 or
        # bf16), accumulation and elementwise math in f32.
        h = x_ref[...].astype(jnp.float32)
        for li in range(n_hidden):
            w = w_refs[li][...]
            h = jnp.dot(h.astype(w.dtype), w, preferred_element_type=jnp.float32)
            h = jnp.maximum(h + b_refs[li][...], 0.0)

        # Final layer split into two lane-aligned heads (mean / log_sigma_sq).
        hm = h.astype(w_mean_ref.dtype)
        mean = jnp.dot(hm, w_mean_ref[...],
                       preferred_element_type=jnp.float32) + b_mean_ref[...]
        log_sigma_sq = jnp.dot(hm, w_logv_ref[...],
                               preferred_element_type=jnp.float32) + b_logv_ref[...]

        # One exp per element; var reused for KL (also numerically safer than
        # sqrt(exp(x))).
        sigma = jnp.exp(0.5 * log_sigma_sq)
        var = sigma * sigma

        # Reparameterization: z = mean + eps * sigma (lane-dense 128-wide store;
        # real latent columns are sliced out in the wrapper).
        z_ref[...] = (mean + eps_ref[...] * sigma).astype(z_ref.dtype)

        # Per-row KL contribution:
        #   -sum(logvar) + sum(exp(logvar)) + sum(mu^2) - latent_dim
        # Padded latent lanes have mean == 0 and log_sigma_sq == 0 exactly
        # (zero-padded weights/biases), contributing exactly
        # (latent_pad - latent_dim) to the var-sum, so subtracting latent_pad
        # instead of latent_dim compensates exactly.
        kl_row = (-jnp.sum(log_sigma_sq, axis=1, keepdims=True)
                  + jnp.sum(var, axis=1, keepdims=True)
                  + jnp.sum(mean * mean, axis=1, keepdims=True)
                  - float(latent_pad))
        kl_ref[...] = kl_row.astype(kl_ref.dtype)

    return kernel


def init_params(key, in_dim, latent_dim, n_layers, layer_size):
    """Deterministic init mimicking nn.Linear default (uniform +/- 1/sqrt(fan_in))."""
    dims = []
    for i in range(n_layers + 1):
        if i == 0:
            dims.append((in_dim, layer_size))
        elif i == n_layers:
            dims.append((layer_size, 2 * latent_dim))
        else:
            dims.append((layer_size, layer_size))
    ws, bs = [], []
    for (fan_in, fan_out) in dims:
        key, kw, kb = jax.random.split(key, 3)
        bound = 1.0 / np.sqrt(fan_in)
        ws.append(jax.random.uniform(kw, (fan_in, fan_out), jnp.float32,
                                     minval=-bound, maxval=bound))
        bs.append(jax.random.uniform(kb, (1, fan_out), jnp.float32,
                                     minval=-bound, maxval=bound))
    return ws, bs


@functools.partial(jax.jit,
                   static_argnames=("latent_dim", "batch_tile", "matmul_dtype"))
def variational_encoder_forward(x, ws, bs, eps, *, latent_dim,
                                batch_tile=128, matmul_dtype=jnp.float32):
    """Runs the full encoder. ws/bs are the unpadded per-linear params
    (last linear has fan_out = 2 * latent_dim, as in the PyTorch module)."""
    B, in_dim = x.shape
    n_hidden = len(ws) - 1
    layer_size = ws[0].shape[1]

    LANE = 128
    in_pad = _round_up(in_dim, LANE)
    layer_pad = _round_up(layer_size, LANE)
    latent_pad = _round_up(latent_dim, LANE)

    # Batch tile: multiple of 8 sublanes, no larger than the (padded) batch.
    tb = max(8, min(_round_up(batch_tile, 8), _round_up(B, 8)))
    b_pad = _round_up(B, tb)
    grid = (b_pad // tb,)

    def pad2(a, rows, cols):
        return jnp.pad(a, ((0, rows - a.shape[0]), (0, cols - a.shape[1])))

    x_p = pad2(x.astype(jnp.float32), b_pad, in_pad)
    eps_p = pad2(eps.astype(jnp.float32), b_pad, latent_pad)

    # Hidden weights/biases, zero-padded; weights cast to matmul dtype (halves
    # HBM->VMEM traffic on v6e/v7x when bf16), biases stay f32.
    w_h, b_h = [], []
    for li in range(n_hidden):
        fan_in_pad = in_pad if li == 0 else layer_pad
        w_h.append(pad2(ws[li], fan_in_pad, layer_pad).astype(matmul_dtype))
        b_h.append(pad2(bs[li], 1, layer_pad).astype(jnp.float32))

    # Split the final [layer, 2*latent] linear into mean / logvar heads.
    w_last, b_last = ws[-1], bs[-1]
    w_mean = pad2(w_last[:, :latent_dim], layer_pad, latent_pad).astype(matmul_dtype)
    w_logv = pad2(w_last[:, latent_dim:], layer_pad, latent_pad).astype(matmul_dtype)
    b_mean = pad2(b_last[:, :latent_dim], 1, latent_pad).astype(jnp.float32)
    b_logv = pad2(b_last[:, latent_dim:], 1, latent_pad).astype(jnp.float32)

    def resident(a):  # full array, same block every grid step -> stays in VMEM
        return pl.BlockSpec(a.shape, lambda i: (0, 0))

    in_specs = ([pl.BlockSpec((tb, in_pad), lambda i: (i, 0))]
                + [resident(w) for w in w_h]
                + [resident(b) for b in b_h]
                + [resident(w_mean), resident(w_logv),
                   resident(b_mean), resident(b_logv)]
                + [pl.BlockSpec((tb, latent_pad), lambda i: (i, 0))])
    out_specs = (pl.BlockSpec((tb, latent_pad), lambda i: (i, 0)),
                 pl.BlockSpec((tb, 1), lambda i: (i, 0)))

    kernel = _make_vae_encoder_kernel(n_hidden, latent_pad)
    z_pad, kl_rows = pl.pallas_call(
        kernel,
        grid=grid,
        in_specs=in_specs,
        out_specs=out_specs,
        out_shape=(jax.ShapeDtypeStruct((b_pad, latent_pad), jnp.float32),
                   jax.ShapeDtypeStruct((b_pad, 1), jnp.float32)),
        compiler_params=pltpu.CompilerParams(
            dimension_semantics=("parallel",),
            # Explicit budget with headroom for v7x's 64 MiB VMEM.
            vmem_limit_bytes=32 * 1024 * 1024),
    )(x_p, *w_h, *b_h, w_mean, w_logv, b_mean, b_logv, eps_p)

    z = z_pad[:B, :latent_dim]
    kl = 0.5 * jnp.mean(kl_rows[:B, 0])
    return z, kl


def _reference_forward(x, ws, bs, eps, latent_dim):
    h = x
    for i in range(len(ws) - 1):
        h = jnp.maximum(h @ ws[i] + bs[i], 0.0)
    out = h @ ws[-1] + bs[-1]
    mean = out[:, :latent_dim]
    log_sigma_sq = out[:, latent_dim:]
    sigma = jnp.sqrt(jnp.exp(log_sigma_sq))
    z = mean + eps * sigma
    kl = 0.5 * jnp.mean(-jnp.sum(log_sigma_sq, 1) + jnp.sum(jnp.exp(log_sigma_sq), 1)
                        + jnp.sum(mean * mean, 1) - latent_dim)
    return z, kl


if __name__ == "__main__":
    # Small shapes consistent with the module's constructor.
    in_dim, latent_dim, n_layers, layer_size = 16, 8, 2, 32
    batch = 24  # with batch_tile=8 -> grid of 3 steps (exercises the pipeline)

    key = jax.random.PRNGKey(0)
    key, kx, keps, kparams = jax.random.split(key, 4)

    x = jax.random.normal(kx, (batch, in_dim), jnp.float32)
    # torch.randn_like(mean) equivalent: fixed noise sampled outside the kernel.
    eps = jax.random.normal(keps, (batch, latent_dim), jnp.float32)
    ws, bs = init_params(kparams, in_dim, latent_dim, n_layers, layer_size)

    # f32 matmul path: exact check against the pure-JAX reference.
    z, kl_loss = variational_encoder_forward(x, ws, bs, eps,
                                             latent_dim=latent_dim, batch_tile=8)
    jax.block_until_ready((z, kl_loss))

    z_ref, kl_ref = _reference_forward(x, ws, bs, eps, latent_dim)
    assert z.shape == (batch, latent_dim)
    assert np.allclose(np.asarray(z), np.asarray(z_ref), atol=1e-5, rtol=1e-5)
    assert np.allclose(np.asarray(kl_loss), np.asarray(kl_ref), atol=1e-5, rtol=1e-5)

    # bf16 matmul-operand path (v6e/v7x MXU): loose numerical check.
    z16, kl16 = variational_encoder_forward(x, ws, bs, eps, latent_dim=latent_dim,
                                            batch_tile=8, matmul_dtype=jnp.bfloat16)
    jax.block_until_ready((z16, kl16))
    assert np.allclose(np.asarray(z16), np.asarray(z_ref), atol=1e-1, rtol=1e-1)
    assert np.allclose(np.asarray(kl16), np.asarray(kl_ref), atol=1e-1, rtol=1e-1)

    print("KERNEL_OK")
</pallas_src>

<mosaic_0001>
module attributes {stable_mosaic.version = 11 : i64} {
  func.func @kernel(%arg0: i32, %arg1: memref<8x128xf32, #tpu.memory_space<vmem>>, %arg2: memref<128x128xf32, #tpu.memory_space<vmem>>, %arg3: memref<128x128xf32, #tpu.memory_space<vmem>>, %arg4: memref<1x128xf32, #tpu.memory_space<vmem>>, %arg5: memref<1x128xf32, #tpu.memory_space<vmem>>, %arg6: memref<128x128xf32, #tpu.memory_space<vmem>>, %arg7: memref<128x128xf32, #tpu.memory_space<vmem>>, %arg8: memref<1x128xf32, #tpu.memory_space<vmem>>, %arg9: memref<1x128xf32, #tpu.memory_space<vmem>>, %arg10: memref<8x128xf32, #tpu.memory_space<vmem>>, %arg11: memref<8x128xf32, #tpu.memory_space<vmem>>, %arg12: memref<8x1xf32, #tpu.memory_space<vmem>>) attributes {dimension_semantics = [#tpu.dimension_semantics<parallel>], iteration_bounds = array<i64: 3>, scalar_prefetch = 0 : i64, scratch_operands = 0 : i64, tpu.core_type = #tpu.core_type<tc>, window_params = [{transform_indices = @transform_0, window_bounds = array<i64: 8, 128>}, {pipeline_mode = #tpu.pipeline_mode<synchronous>, transform_indices = @transform_1, window_bounds = array<i64: 128, 128>}, {pipeline_mode = #tpu.pipeline_mode<synchronous>, transform_indices = @transform_2, window_bounds = array<i64: 128, 128>}, {pipeline_mode = #tpu.pipeline_mode<synchronous>, transform_indices = @transform_3, window_bounds = array<i64: 1, 128>}, {pipeline_mode = #tpu.pipeline_mode<synchronous>, transform_indices = @transform_4, window_bounds = array<i64: 1, 128>}, {pipeline_mode = #tpu.pipeline_mode<synchronous>, transform_indices = @transform_5, window_bounds = array<i64: 128, 128>}, {pipeline_mode = #tpu.pipeline_mode<synchronous>, transform_indices = @transform_6, window_bounds = array<i64: 128, 128>}, {pipeline_mode = #tpu.pipeline_mode<synchronous>, transform_indices = @transform_7, window_bounds = array<i64: 1, 128>}, {pipeline_mode = #tpu.pipeline_mode<synchronous>, transform_indices = @transform_8, window_bounds = array<i64: 1, 128>}, {transform_indices = @transform_9, window_bounds = array<i64: 8, 128>}, {transform_indices = @transform_10, window_bounds = array<i64: 8, 128>}, {transform_indices = @transform_11, window_bounds = array<i64: 8, 1>}]} {
    %c0 = arith.constant 0 : index
    %c0_0 = arith.constant 0 : index
    %0 = vector.load %arg1[%c0, %c0_0] : memref<8x128xf32, #tpu.memory_space<vmem>>, vector<8x128xf32>
    %c0_1 = arith.constant 0 : index
    %c0_2 = arith.constant 0 : index
    %1 = vector.load %arg2[%c0_1, %c0_2] : memref<128x128xf32, #tpu.memory_space<vmem>>, vector<128x128xf32>
    %cst = arith.constant dense<0.000000e+00> : vector<8x128xf32>
    %2 = tpu.matmul %0, %1, %cst {dimension_numbers = #tpu.dot_dimension_numbers<[1], [0], [0], [1], [0, 0, 1, 1], [], []>} : vector<8x128xf32>, vector<128x128xf32>, vector<8x128xf32> -> vector<8x128xf32>
    %c0_3 = arith.constant 0 : index
    %c0_4 = arith.constant 0 : index
    %3 = vector.load %arg4[%c0_3, %c0_4] : memref<1x128xf32, #tpu.memory_space<vmem>>, vector<1x128xf32>
    %4 = vector.broadcast %3 : vector<1x128xf32> to vector<8x128xf32>
    %5 = arith.addf %2, %4 : vector<8x128xf32>
    %cst_5 = arith.constant 0.000000e+00 : f32
    %6 = vector.broadcast %cst_5 : f32 to vector<8x128xf32>
    %7 = arith.maximumf %5, %6 : vector<8x128xf32>
    %c0_6 = arith.constant 0 : index
    %c0_7 = arith.constant 0 : index
    %8 = vector.load %arg3[%c0_6, %c0_7] : memref<128x128xf32, #tpu.memory_space<vmem>>, vector<128x128xf32>
    %cst_8 = arith.constant dense<0.000000e+00> : vector<8x128xf32>
    %9 = tpu.matmul %7, %8, %cst_8 {dimension_numbers = #tpu.dot_dimension_numbers<[1], [0], [0], [1], [0, 0, 1, 1], [], []>} : vector<8x128xf32>, vector<128x128xf32>, vector<8x128xf32> -> vector<8x128xf32>
    %c0_9 = arith.constant 0 : index
    %c0_10 = arith.constant 0 : index
    %10 = vector.load %arg5[%c0_9, %c0_10] : memref<1x128xf32, #tpu.memory_space<vmem>>, vector<1x128xf32>
    %11 = vector.broadcast %10 : vector<1x128xf32> to vector<8x128xf32>
    %12 = arith.addf %9, %11 : vector<8x128xf32>
    %cst_11 = arith.constant 0.000000e+00 : f32
    %13 = vector.broadcast %cst_11 : f32 to vector<8x128xf32>
    %14 = arith.maximumf %12, %13 : vector<8x128xf32>
    %c0_12 = arith.constant 0 : index
    %c0_13 = arith.constant 0 : index
    %15 = vector.load %arg6[%c0_12, %c0_13] : memref<128x128xf32, #tpu.memory_space<vmem>>, vector<128x128xf32>
    %cst_14 = arith.constant dense<0.000000e+00> : vector<8x128xf32>
    %16 = tpu.matmul %14, %15, %cst_14 {dimension_numbers = #tpu.dot_dimension_numbers<[1], [0], [0], [1], [0, 0, 1, 1], [], []>} : vector<8x128xf32>, vector<128x128xf32>, vector<8x128xf32> -> vector<8x128xf32>
    %c0_15 = arith.constant 0 : index
    %c0_16 = arith.constant 0 : index
    %17 = vector.load %arg8[%c0_15, %c0_16] : memref<1x128xf32, #tpu.memory_space<vmem>>, vector<1x128xf32>
    %18 = vector.broadcast %17 : vector<1x128xf32> to vector<8x128xf32>
    %19 = arith.addf %16, %18 : vector<8x128xf32>
    %c0_17 = arith.constant 0 : index
    %c0_18 = arith.constant 0 : index
    %20 = vector.load %arg7[%c0_17, %c0_18] : memref<128x128xf32, #tpu.memory_space<vmem>>, vector<128x128xf32>
    %cst_19 = arith.constant dense<0.000000e+00> : vector<8x128xf32>
    %21 = tpu.matmul %14, %20, %cst_19 {dimension_numbers = #tpu.dot_dimension_numbers<[1], [0], [0], [1], [0, 0, 1, 1], [], []>} : vector<8x128xf32>, vector<128x128xf32>, vector<8x128xf32> -> vector<8x128xf32>
    %c0_20 = arith.constant 0 : index
    %c0_21 = arith.constant 0 : index
    %22 = vector.load %arg9[%c0_20, %c0_21] : memref<1x128xf32, #tpu.memory_space<vmem>>, vector<1x128xf32>
    %23 = vector.broadcast %22 : vector<1x128xf32> to vector<8x128xf32>
    %24 = arith.addf %21, %23 : vector<8x128xf32>
    %cst_22 = arith.constant 5.000000e-01 : f32
    %25 = vector.broadcast %cst_22 : f32 to vector<8x128xf32>
    %26 = arith.mulf %25, %24 : vector<8x128xf32>
    %27 = math.exp %26 : vector<8x128xf32>
    %28 = arith.mulf %27, %27 : vector<8x128xf32>
    %c0_23 = arith.constant 0 : index
    %c0_24 = arith.constant 0 : index
    %29 = vector.load %arg10[%c0_23, %c0_24] : memref<8x128xf32, #tpu.memory_space<vmem>>, vector<8x128xf32>
    %30 = arith.mulf %29, %27 : vector<8x128xf32>
    %31 = arith.addf %19, %30 : vector<8x128xf32>
    %c0_25 = arith.constant 0 : index
    %c0_26 = arith.constant 0 : index
    %32 = vector.load %arg11[%c0_25, %c0_26] : memref<8x128xf32, #tpu.memory_space<vmem>>, vector<8x128xf32>
    tpu.vector_store %arg11[%c0_25, %c0_26], %31 {strides = array<i32>} : memref<8x128xf32, #tpu.memory_space<vmem>>, vector<8x128xf32>,
    %cst_27 = arith.constant dense<0.000000e+00> : vector<8xf32>
    %33 = vector.multi_reduction <add>, %24, %cst_27 [1] : vector<8x128xf32> to vector<8xf32>
    %34 = vector.shape_cast %33 : vector<8xf32> to vector<8x1xf32>
    %cst_28 = arith.constant 0.000000e+00 : f32
    %35 = vector.broadcast %cst_28 : f32 to vector<8x1xf32>
    %36 = arith.subf %35, %34 : vector<8x1xf32>
    %cst_29 = arith.constant dense<0.000000e+00> : vector<8xf32>
    %37 = vector.multi_reduction <add>, %28, %cst_29 [1] : vector<8x128xf32> to vector<8xf32>
    %38 = vector.shape_cast %37 : vector<8xf32> to vector<8x1xf32>
    %39 = arith.addf %36, %38 : vector<8x1xf32>
    %40 = arith.mulf %19, %19 : vector<8x128xf32>
    %cst_30 = arith.constant dense<0.000000e+00> : vector<8xf32>
    %41 = vector.multi_reduction <add>, %40, %cst_30 [1] : vector<8x128xf32> to vector<8xf32>
    %42 = vector.shape_cast %41 : vector<8xf32> to vector<8x1xf32>
    %43 = arith.addf %39, %42 : vector<8x1xf32>
    %cst_31 = arith.constant 1.280000e+02 : f32
    %44 = vector.broadcast %cst_31 : f32 to vector<8x1xf32>
    %45 = arith.subf %43, %44 : vector<8x1xf32>
    %c0_32 = arith.constant 0 : index
    %c0_33 = arith.constant 0 : index
    %46 = vector.load %arg12[%c0_32, %c0_33] : memref<8x1xf32, #tpu.memory_space<vmem>>, vector<8x1xf32>
    tpu.vector_store %arg12[%c0_32, %c0_33], %45 {strides = array<i32>} : memref<8x1xf32, #tpu.memory_space<vmem>>, vector<8x1xf32>,
    return
  }
  func.func @transform_0(%arg0: i32) -> (i32, i32) {
    %c0_i32 = arith.constant 0 : i32
    %c0_i32_0 = arith.constant 0 : i32
    return %arg0, %c0_i32 : i32, i32
  }
  func.func @transform_1(%arg0: i32) -> (i32, i32) {
    %c0_i32 = arith.constant 0 : i32
    %c0_i32_0 = arith.constant 0 : i32
    %c0_i32_1 = arith.constant 0 : i32
    return %c0_i32, %c0_i32_0 : i32, i32
  }
  func.func @transform_2(%arg0: i32) -> (i32, i32) {
    %c0_i32 = arith.constant 0 : i32
    %c0_i32_0 = arith.constant 0 : i32
    %c0_i32_1 = arith.constant 0 : i32
    return %c0_i32, %c0_i32_0 : i32, i32
  }
  func.func @transform_3(%arg0: i32) -> (i32, i32) {
    %c0_i32 = arith.constant 0 : i32
    %c0_i32_0 = arith.constant 0 : i32
    %c0_i32_1 = arith.constant 0 : i32
    return %c0_i32, %c0_i32_0 : i32, i32
  }
  func.func @transform_4(%arg0: i32) -> (i32, i32) {
    %c0_i32 = arith.constant 0 : i32
    %c0_i32_0 = arith.constant 0 : i32
    %c0_i32_1 = arith.constant 0 : i32
    return %c0_i32, %c0_i32_0 : i32, i32
  }
  func.func @transform_5(%arg0: i32) -> (i32, i32) {
    %c0_i32 = arith.constant 0 : i32
    %c0_i32_0 = arith.constant 0 : i32
    %c0_i32_1 = arith.constant 0 : i32
    return %c0_i32, %c0_i32_0 : i32, i32
  }
  func.func @transform_6(%arg0: i32) -> (i32, i32) {
    %c0_i32 = arith.constant 0 : i32
    %c0_i32_0 = arith.constant 0 : i32
    %c0_i32_1 = arith.constant 0 : i32
    return %c0_i32, %c0_i32_0 : i32, i32
  }
  func.func @transform_7(%arg0: i32) -> (i32, i32) {
    %c0_i32 = arith.constant 0 : i32
    %c0_i32_0 = arith.constant 0 : i32
    %c0_i32_1 = arith.constant 0 : i32
    return %c0_i32, %c0_i32_0 : i32, i32
  }
  func.func @transform_8(%arg0: i32) -> (i32, i32) {
    %c0_i32 = arith.constant 0 : i32
    %c0_i32_0 = arith.constant 0 : i32
    %c0_i32_1 = arith.constant 0 : i32
    return %c0_i32, %c0_i32_0 : i32, i32
  }
  func.func @transform_9(%arg0: i32) -> (i32, i32) {
    %c0_i32 = arith.constant 0 : i32
    %c0_i32_0 = arith.constant 0 : i32
    return %arg0, %c0_i32 : i32, i32
  }
  func.func @transform_10(%arg0: i32) -> (i32, i32) {
    %c0_i32 = arith.constant 0 : i32
    %c0_i32_0 = arith.constant 0 : i32
    return %arg0, %c0_i32 : i32, i32
  }
  func.func @transform_11(%arg0: i32) -> (i32, i32) {
    %c0_i32 = arith.constant 0 : i32
    %c0_i32_0 = arith.constant 0 : i32
    return %arg0, %c0_i32 : i32, i32
  }
}

</mosaic_0001>

<bundles_post_ra>
// kernel: variational_encoder_forward.1
= control target key start
LH: loop header
LB: loop body
LE: loop exit
PB: predicated region body
PF: predicated region fallthrough
CT: control target
= control target key end

     0   :  { %s784_s17 = smov 0   ;;  %s1021_s0 = inlined_call_operand.vmem [shape: f32[24,128], index: 0, kind: input, shape index: {}]   ;;  %s1022_s1 = inlined_call_operand.vmem [shape: f32[128,128], index: 1, kind: input, shape index: {}]   ;;  %s1023_s2 = inlined_call_operand.vmem [shape: f32[128,128], index: 2, kind: input, shape index: {}]   ;;  %s1024_s3 = inlined_call_operand.vmem [shape: f32[1,128], index: 3, kind: input, shape index: {}]   ;;  %s1025_s4 = inlined_call_operand.vmem [shape: f32[1,128], index: 4, kind: input, shape index: {}]   ;;  %s1026_s5 = inlined_call_operand.vmem [shape: f32[128,128], index: 5, kind: input, shape index: {}]   ;;  %s1027_s6 = inlined_call_operand.vmem [shape: f32[128,128], index: 6, kind: input, shape index: {}]   ;;  %s1028_s7 = inlined_call_operand.vmem [shape: f32[1,128], index: 7, kind: input, shape index: {}]   ;;  %s1029_s8 = inlined_call_operand.vmem [shape: f32[1,128], index: 8, kind: input, shape index: {}]   ;;  %s1030_s9 = inlined_call_operand.vmem [shape: f32[24,128], index: 9, kind: input, shape index: {}]   ;;  %s1031_s10 = inlined_call_operand.vmem [shape: f32[24,128], index: 10, kind: output, shape index: {0}]   ;;  %s1032_s11 = inlined_call_operand.vmem [shape: f32[24,1], index: 11, kind: output, shape index: {1}]  }
   0x1 LB: > { %s690_s18 = sadd.s32 4294967295, %s722_s17   ;;  %p694_p0 = scmp.ge.s32.totalorder %s722_s17, 1  ;;  %s722_s17 = sphi %s784_s17, %s22_s17  }
   0x2   : > { %p348_p1 = scmp.lt.s32.totalorder %s722_s17, 4 }
   0x4   : > { %p349_p2 = pnand %p694_p0, %p348_p1 }
   0x5   : > { %p394_p3 = scmp.lt.s32.totalorder (!%p349_p2), %s690_s18, 2 }
   0x6   : > { %352 = sbr.rel (%p349_p2) target bundleno = 573 (0x23d), region = 60 }
   0xb   : > { %v426_v0 = vld [vmem:[%s1022_s1 + $0x78] sm:$0xff]  ;;  %v425_v1 = vld [vmem:[%s1022_s1 + $0x70] sm:$0xff]  ;;  %v424_v2 = vld [vmem:[%s1022_s1 + $0x68] sm:$0xff]  ;;  %s1034_s18 = smov (!%p394_p3, %s690_s18), 2  ;;  %vm592_vm0 = vcmask 7168  }
   0xc   : > { %431 = vmatpush.msra.mxu0 %v426_v0  ;;  %v423_v3 = vld [vmem:[%s1022_s1 + $0x60] sm:$0xff]  ;;  %v467_v4 = vld [vmem:[%s1023_s2 + $0x78] sm:$0xff]  ;;  %v466_v5 = vld [vmem:[%s1023_s2 + $0x70] sm:$0xff]  ;;  %s865_s12 = sshll.u32 %s1034_s18, 3 }
   0xd   : > { %v422_v6 = vld [vmem:[%s1022_s1 + $0x58] sm:$0xff]  ;;  %472 = vmatpush.msra.mxu1 %v467_v4  ;;  %v465_v7 = vld [vmem:[%s1023_s2 + $0x68] sm:$0xff]  ;;  %v421_v8 = vld [vmem:[%s1022_s1 + $0x50] sm:$0xff]  ;;  %s397_s24 = scalar_lea.vmem %s1021_s0, %s865_s12  ;;  %s405_s27 = scalar_lea.vmem %s1031_s10, %s865_s12 }
   0xe   : > { %432 = vmatpush.msra.mxu0 %v425_v1  ;;  %v464_v9 = vld [vmem:[%s1023_s2 + $0x60] sm:$0xff]  ;;  %v420_v10 = vld [vmem:[%s1022_s1 + $0x48] sm:$0xff]  ;;  %v463_v11 = vld [vmem:[%s1023_s2 + $0x58] sm:$0xff]  ;;  %s409_s30 = scalar_lea.vmem %s1032_s11, %s865_s12 }
   0xf   : > { %473 = vmatpush.msra.mxu1 %v466_v5  ;;  %v419_v12 = vld [vmem:[%s1022_s1 + $0x40] sm:$0xff]  ;;  %v462_v13 = vld [vmem:[%s1023_s2 + $0x50] sm:$0xff]  ;;  %v418_v14 = vld [vmem:[%s1022_s1 + $0x38] sm:$0xff] }
  0x10   : > { %433 = vmatpush.msra.mxu0 %v424_v2  ;;  %v461_v15 = vld [vmem:[%s1023_s2 + $0x48] sm:$0xff]  ;;  %v417_v16 = vld [vmem:[%s1022_s1 + $0x30] sm:$0xff]  ;;  %v460_v17 = vld [vmem:[%s1023_s2 + $0x40] sm:$0xff] }
  0x11   : > { %474 = vmatpush.msra.mxu1 %v465_v7  ;;  %v416_v18 = vld [vmem:[%s1022_s1 + $0x28] sm:$0xff]  ;;  %v459_v19 = vld [vmem:[%s1023_s2 + $0x38] sm:$0xff]  ;;  %v415_v20 = vld [vmem:[%s1022_s1 + $0x20] sm:$0xff] }
  0x12   : > { %434 = vmatpush.msra.mxu0 %v423_v3  ;;  %v458_v21 = vld [vmem:[%s1023_s2 + $0x30] sm:$0xff]  ;;  %v414_v22 = vld [vmem:[%s1022_s1 + $0x18] sm:$0xff]  ;;  %v457_v23 = vld [vmem:[%s1023_s2 + $0x28] sm:$0xff] }
  0x13   : > { %475 = vmatpush.msra.mxu1 %v464_v9  ;;  %v413_v24 = vld [vmem:[%s1022_s1 + $0x10] sm:$0xff]  ;;  %v456_v25 = vld [vmem:[%s1023_s2 + $0x20] sm:$0xff]  ;;  %v412_v26 = vld [vmem:[%s1022_s1 + $0x8] sm:$0xff] }
  0x14   : > { %435 = vmatpush.msra.mxu0 %v422_v6  ;;  %v455_v27 = vld [vmem:[%s1023_s2 + $0x18] sm:$0xff]  ;;  %v411_v28 = vld [vmem:[%s1022_s1] sm:$0xff]  ;;  %v454_v30 = vld [vmem:[%s1023_s2 + $0x10] sm:$0xff] }
  0x15   : > { %476 = vmatpush.msra.mxu1 %v463_v11  ;;  %v410_v29 = vld [vmem:[%s397_s24] sm:$0xff]  ;;  %v453_v31 = vld [vmem:[%s1023_s2 + $0x8] sm:$0xff]  ;;  %v508_v33 = vld [vmem:[%s1026_s5 + $0x78] sm:$0xff]  ;;  %s401_s24 = scalar_lea.vmem %s1030_s9, %s865_s12 }
  0x16   : > { %436 = vmatpush.msra.mxu0 %v421_v8  ;;  %v452_v32 = vld [vmem:[%s1023_s2] sm:$0xff]  ;;  %v548_v34 = vld [vmem:[%s1027_s6 + $0x78] sm:$0xff]  ;;  %v507_v35 = vld [vmem:[%s1026_s5 + $0x70] sm:$0xff]  ;;  %513 = vmatpush.msra.mxu2 %v508_v33 }
  0x17   : > { %477 = vmatpush.msra.mxu1 %v462_v13  ;;  %553 = vmatpush.msra.mxu3 %v548_v34  ;;  %v547_v36 = vld [vmem:[%s1027_s6 + $0x70] sm:$0xff]  ;;  %v506_v37 = vld [vmem:[%s1026_s5 + $0x68] sm:$0xff]  ;;  %v505_v39 = vld [vmem:[%s1026_s5 + $0x60] sm:$0xff] }
  0x18   : > { %437 = vmatpush.msra.mxu0 %v420_v10  ;;  %v546_v38 = vld [vmem:[%s1027_s6 + $0x68] sm:$0xff]  ;;  %514 = vmatpush.msra.mxu2 %v507_v35  ;;  %v545_v40 = vld [vmem:[%s1027_s6 + $0x60] sm:$0xff]  ;;  %v504_v41 = vld [vmem:[%s1026_s5 + $0x58] sm:$0xff] }
  0x19   : > { %478 = vmatpush.msra.mxu1 %v461_v15  ;;  %554 = vmatpush.msra.mxu3 %v547_v36  ;;  %v544_v42 = vld [vmem:[%s1027_s6 + $0x58] sm:$0xff]  ;;  %v503_v43 = vld [vmem:[%s1026_s5 + $0x50] sm:$0xff]  ;;  %v502_v45 = vld [vmem:[%s1026_s5 + $0x48] sm:$0xff] }
  0x1a   : > { %438 = vmatpush.msra.mxu0 %v419_v12  ;;  %515 = vmatpush.msra.mxu2 %v506_v37  ;;  %v543_v44 = vld [vmem:[%s1027_s6 + $0x50] sm:$0xff]  ;;  %v542_v46 = vld [vmem:[%s1027_s6 + $0x48] sm:$0xff]  ;;  %v501_v47 = vld [vmem:[%s1026_s5 + $0x40] sm:$0xff] }
  0x1b   : > { %479 = vmatpush.msra.mxu1 %v460_v17  ;;  %555 = vmatpush.msra.mxu3 %v546_v38  ;;  %v541_v48 = vld [vmem:[%s1027_s6 + $0x40] sm:$0xff]  ;;  %v500_v49 = vld [vmem:[%s1026_s5 + $0x38] sm:$0xff]  ;;  %v499_v51 = vld [vmem:[%s1026_s5 + $0x30] sm:$0xff] }
  0x1c   : > { %439 = vmatpush.msra.mxu0 %v418_v14  ;;  %516 = vmatpush.msra.mxu2 %v505_v39  ;;  %v540_v50 = vld [vmem:[%s1027_s6 + $0x38] sm:$0xff]  ;;  %v539_v52 = vld [vmem:[%s1027_s6 + $0x30] sm:$0xff]  ;;  %v498_v53 = vld [vmem:[%s1026_s5 + $0x28] sm:$0xff] }
  0x1d   : > { %480 = vmatpush.msra.mxu1 %v459_v19  ;;  %556 = vmatpush.msra.mxu3 %v545_v40  ;;  %v538_v54 = vld [vmem:[%s1027_s6 + $0x28] sm:$0xff]  ;;  %v497_v55 = vld [vmem:[%s1026_s5 + $0x20] sm:$0xff]  ;;  %v496_v57 = vld [vmem:[%s1026_s5 + $0x18] sm:$0xff] }
  0x1e   : > { %440 = vmatpush.msra.mxu0 %v417_v16  ;;  %517 = vmatpush.msra.mxu2 %v504_v41  ;;  %v537_v56 = vld [vmem:[%s1027_s6 + $0x20] sm:$0xff]  ;;  %v536_v58 = vld [vmem:[%s1027_s6 + $0x18] sm:$0xff]  ;;  %v495_v63 = vld [vmem:[%s1026_s5 + $0x10] sm:$0xff] }
  0x1f   : > { %481 = vmatpush.msra.mxu1 %v458_v21  ;;  %557 = vmatpush.msra.mxu3 %v544_v42  ;;  %v710_v59 = vld [vmem:[%s1024_s3] ss:$0 sm:$0xff]  ;;  %v535_v0 = vld [vmem:[%s1027_s6 + $0x10] sm:$0xff]  ;;  %v494_v1 = vld [vmem:[%s1026_s5 + $0x8] sm:$0xff] }
  0x20   : > { %441 = vmatpush.msra.mxu0 %v416_v18  ;;  %518 = vmatpush.msra.mxu2 %v503_v43  ;;  %v534_v2 = vld [vmem:[%s1027_s6 + $0x8] sm:$0xff]  ;;  %v493_v3 = vld [vmem:[%s1026_s5] sm:$0xff] }
  0x21   : > { %482 = vmatpush.msra.mxu1 %v457_v23  ;;  %558 = vmatpush.msra.mxu3 %v543_v44  ;;  %v533_v4 = vld [vmem:[%s1027_s6] sm:$0xff] }
  0x22   : > { %442 = vmatpush.msra.mxu0 %v415_v20  ;;  %519 = vmatpush.msra.mxu2 %v502_v45  ;;  %v711_v5 = vld [vmem:[%s1025_s4] ss:$0 sm:$0xff] }
  0x23   : > { %483 = vmatpush.msra.mxu1 %v456_v25  ;;  %559 = vmatpush.msra.mxu3 %v542_v46  ;;  %v712_v9 = vld [vmem:[%s1028_s7] ss:$0 sm:$0xff] }
  0x24   : > { %443 = vmatpush.msra.mxu0 %v414_v22  ;;  %520 = vmatpush.msra.mxu2 %v501_v47  ;;  %v713_v10 = vld [vmem:[%s1029_s8] ss:$0 sm:$0xff] }
  0x25   : > { %484 = vmatpush.msra.mxu1 %v455_v27  ;;  %560 = vmatpush.msra.mxu3 %v541_v48  ;;  %v577_v18 = vld [vmem:[%s401_s24] sm:$0xff] }
  0x26   : > { %444 = vmatpush.msra.mxu0 %v413_v24  ;;  %521 = vmatpush.msra.mxu2 %v500_v49 }
  0x27   : > { %485 = vmatpush.msra.mxu1 %v454_v30  ;;  %561 = vmatpush.msra.mxu3 %v540_v50 }
  0x28   : > { %445 = vmatpush.msra.mxu0 %v412_v26  ;;  %522 = vmatpush.msra.mxu2 %v499_v51 }
  0x29   : > { %486 = vmatpush.msra.mxu1 %v453_v31  ;;  %562 = vmatpush.msra.mxu3 %v539_v52 }
  0x2a   : > { %446 = vmatpush.msra.mxu0 %v411_v28  ;;  %523 = vmatpush.msra.mxu2 %v498_v53 }
  0x2b   : > { %447 = vmatmul.f32.vlgmr.msra.gmra.mxu0 %v410_v29  ;;  %487 = vmatpush.msra.mxu1 %v452_v32 }
  0x2c   : > { %563 = vmatpush.msra.mxu3 %v538_v54  ;;  %524 = vmatpush.msra.mxu2 %v497_v55 }
  0x2e   : > { %564 = vmatpush.msra.mxu3 %v537_v56  ;;  %525 = vmatpush.msra.mxu2 %v496_v57 }
  0x30   : > { %565 = vmatpush.msra.mxu3 %v536_v58  ;;  %526 = vmatpush.msra.mxu2 %v495_v63 }
  0x32   : > { %566 = vmatpush.msra.mxu3 %v535_v0  ;;  %527 = vmatpush.msra.mxu2 %v494_v1 }
  0x34   : > { %567 = vmatpush.msra.mxu3 %v534_v2  ;;  %528 = vmatpush.msra.mxu2 %v493_v3 }
  0x36   : > { %568 = vmatpush.msra.mxu3 %v533_v4 }
  0xa8   : > { %v448_v60 = vpop.f32.mrf.mxu0 }
  0xa9   : > { %v449_v61 = vadd.f32 %v710_v59, %v448_v60 }
  0xab   : > { %v451_v62 = vmax.f32 %v449_v61, 0.0 }
  0xad   : > { %488 = vmatmul.f32.vlgmr.msra.gmra.mxu1 %v451_v62 }
 0x12a   : > { %v489_v6 = vpop.f32.mrf.mxu1 }
 0x12b   : > { %v490_v7 = vadd.f32 %v711_v5, %v489_v6 }
 0x12d   : > { %v492_v8 = vmax.f32 %v490_v7, 0.0 }
 0x12f   : > { %529 = vmatmul.f32.vlgmr.msra.gmra.mxu2 %v492_v8  ;;  %569 = vmatmul.f32.vlgmr.msra.gmra.mxu3 %v492_v8 }
 0x1b2   : > { %v530_v11 = vpop.f32.mrf.mxu2  ;;  %v570_v12 = vpop.f32.mrf.mxu3 }
 0x1b3   : > { %v531_v13 = vadd.f32 %v712_v9, %v530_v11  ;;  %v571_v14 = vadd.f32 %v713_v10, %v570_v12 }
 0x1b5   : > { %v573_v15 = vmul.f32 0.5, %v571_v14  ;;  %581 = vadd.xlane.f32.xlu0 %v571_v14  ;;  %v587_v16 = vmul.f32 %v531_v13, %v531_v13 }
 0x1b7   : > { %v574_v17 = vmul.f32 1.442695, %v573_v15  ;;  %588 = vadd.xlane.f32.xlu1 %v587_v16 }
 0x1b9   : > { %714 = vpow2.f32 %v574_v17 }
 0x1bf   : > { %v715_v19 = vpop.eup %714 }
 0x1c0   : > { %v578_v20 = vmul.f32 %v715_v19, %v577_v18  ;;  %v576_v21 = vmul.f32 %v715_v19, %v715_v19 }
 0x1c2   : > { %v579_v22 = vadd.f32 %v578_v20, %v531_v13  ;;  %584 = vadd.xlane.f32.xlu0 %v576_v21 }
 0x1c4   : > { %580 = vst [vmem:[%s405_s27] sm:$0xff] %v579_v22 }
 0x228   : > { %v582_v23 = vpop.xlane.xlu0 %581 }
 0x229   : > { %v583_v24 = vsub.f32 0.0, %v582_v23 }
 0x22a   : > { %v589_v27 = vpop.xlane.xlu1 %588 }
 0x235   : > { %v585_v25 = vpop.xlane.xlu0 %584 }
 0x236   : > { %v586_v26 = vadd.f32 %v585_v25, %v583_v24 }
 0x238   : > { %v590_v28 = vadd.f32 %v589_v27, %v586_v26 }
 0x23a   : > { %v699_v29 = vadd.f32 -128.0, %v590_v28 }
 0x23c   : > { %593 = vst.msk [vmem:[%s409_s30] sm:$0xff] %vm592_vm0, %v699_v29 }
 0x23d PF: > { %s22_s17 = sadd.s32 1, %s722_s17  }
 0x23e   : > { %p19_p4 = scmp.ge.s32.totalorder %s22_s17, 5  }
 0x240   :  { %21 = sbr.rel (!%p19_p4) target bundleno = 1 (0x1), region = 105 }

</bundles_post_ra>
